<compile_context>
chip_gen: v7x
topology: tpu7x:2x2x1
jax: 0.10.0
libtpu: 0.0.40
codegen_flags: <defaults>
</compile_context>

<pallas_src>
import math

import jax
import jax.numpy as jnp
from jax.experimental import pallas as pl
from jax.experimental.pallas import tpu as pltpu


def _copy_kernel(x_ref, o_ref):
    # Pure identity copy of one lane-dense tile of the flattened array.
    o_ref[...] = x_ref[...]


def _largest_divisor_leq(n: int, limit: int, multiple_of: int = 1) -> int:
    """Largest divisor d of n with d <= limit and d % multiple_of == 0 (0 if none)."""
    best = 0
    i = 1
    while i * i <= n:
        if n % i == 0:
            for d in (i, n // i):
                if d <= limit and d % multiple_of == 0 and d > best:
                    best = d
        i += 1
    return best


def _materialize_copy(x: jax.Array) -> jax.Array:
    """Materialize a fresh (B, F) buffer with a lane-dense streaming copy."""
    B, F = x.shape
    itemsize = jnp.dtype(x.dtype).itemsize
    N = B * F

    # 3 MiB per tile buffer -> 2(in)+2(out) double-buffered = 12 MiB VMEM,
    # safe under v5e's 16 MiB default scoped limit and tiny on v6e/v7x.
    budget_bytes = 3 * 1024 * 1024
    budget_elems = max(128, budget_bytes // itemsize)

    if N % 128 != 0:
        # Rare irregular case: copy the whole (B, F) array as one full block
        # (full-dim blocks are exempt from the (8, 128) divisibility rule).
        # TODO(synk): for huge non-128-divisible inputs, chunk this instead.
        return pl.pallas_call(
            _copy_kernel,
            out_shape=jax.ShapeDtypeStruct((B, F), x.dtype),
            grid=(1,),
            in_specs=[pl.BlockSpec((B, F), lambda i: (0, 0))],
            out_specs=pl.BlockSpec((B, F), lambda i: (0, 0)),
        )(x)

    # Re-block over a flattened (R, L) view (element order is identical to the
    # row-major (B, F) / (B, C, S, S) layouts, so this is metadata-only).
    M = N // 128
    dL = _largest_divisor_leq(M, max(1, budget_elems // 128))
    L = 128 * dL            # largest multiple of 128 dividing N, within budget
    R = N // L
    x2 = x.reshape(R, L)

    budget_rows = max(1, budget_elems // L)
    if R <= budget_rows:
        tr = R              # single full-height block (full dim: always legal)
    else:
        tr = _largest_divisor_leq(R, budget_rows, multiple_of=8)
        if tr == 0:
            # No even divisor fits: accept one masked remainder tile (perf only).
            tr = max(8, (budget_rows // 8) * 8)
    grid = (pl.cdiv(R, tr),)

    y2 = pl.pallas_call(
        _copy_kernel,
        out_shape=jax.ShapeDtypeStruct((R, L), x.dtype),
        grid=grid,
        in_specs=[pl.BlockSpec((tr, L), lambda i: (i, 0))],
        out_specs=pl.BlockSpec((tr, L), lambda i: (i, 0)),
        compiler_params=pltpu.CompilerParams(
            dimension_semantics=("parallel",),
        ),
        cost_estimate=pl.CostEstimate(
            flops=0,
            transcendentals=0,
            bytes_accessed=2 * N * itemsize,
        ),
    )(x2)
    return y2.reshape(B, F)


def unflatten(x: jax.Array, n_channels: int, *, materialize: bool = False) -> jax.Array:
    """Pallas/JAX implementation of UnFlatten.forward.

    x: (B, F) with F = n_channels * size * size
    returns: (B, n_channels, size, size)

    By default this is the metadata-only reshape (exact torch .view semantics
    on a contiguous tensor, zero bytes moved).  Pass materialize=True to force
    a fresh buffer via the Pallas streaming-copy kernel.
    """
    B, F = x.shape
    size = math.isqrt(F // n_channels)
    assert n_channels * size * size == F, "feature dim not compatible with n_channels"

    if not materialize:
        return x.reshape(B, n_channels, size, size)

    y = _materialize_copy(x)
    return y.reshape(B, n_channels, size, size)


if __name__ == "__main__":
    # Small deterministic example consistent with the module:
    # n_channels=4, spatial size=16 -> flat feature dim = 4*16*16 = 1024, batch=2.
    B, C, S = 2, 4, 16
    F = C * S * S
    key = jax.random.PRNGKey(0)
    x = jax.random.normal(key, (B, F), dtype=jnp.float32)

    # Reference: plain reshape (exact PyTorch .view semantics).
    ref = x.reshape(B, C, S, S)

    # Default (zero-copy) path.
    out_view = unflatten(x, n_channels=C)
    out_view = jax.block_until_ready(out_view)
    assert out_view.shape == (B, C, S, S)
    assert jnp.array_equal(out_view, ref), "view-path mismatch vs reference"

    # Pallas materialize path (runs the kernel once).
    out_kernel = unflatten(x, n_channels=C, materialize=True)
    out_kernel = jax.block_until_ready(out_kernel)
    assert out_kernel.shape == (B, C, S, S), out_kernel.shape
    assert out_kernel.dtype == x.dtype
    assert jnp.array_equal(out_kernel, ref), "kernel-path mismatch vs reference"

    print("KERNEL_OK")
</pallas_src>

<mosaic_0001>
module attributes {stable_mosaic.version = 11 : i64} {
  func.func @_copy_kernel(%arg0: i32, %arg1: memref<1x2048xf32, #tpu.memory_space<vmem>>, %arg2: memref<1x2048xf32, #tpu.memory_space<vmem>>) attributes {dimension_semantics = [#tpu.dimension_semantics<parallel>], iteration_bounds = array<i64: 1>, scalar_prefetch = 0 : i64, scratch_operands = 0 : i64, tpu.core_type = #tpu.core_type<tc>, window_params = [{transform_indices = @transform_0, window_bounds = array<i64: 1, 2048>}, {transform_indices = @transform_1, window_bounds = array<i64: 1, 2048>}]} {
    %c0 = arith.constant 0 : index
    %c0_0 = arith.constant 0 : index
    %0 = vector.load %arg1[%c0, %c0_0] : memref<1x2048xf32, #tpu.memory_space<vmem>>, vector<1x2048xf32>
    %c0_1 = arith.constant 0 : index
    %c0_2 = arith.constant 0 : index
    %1 = vector.load %arg2[%c0_1, %c0_2] : memref<1x2048xf32, #tpu.memory_space<vmem>>, vector<1x2048xf32>
    tpu.vector_store %arg2[%c0_1, %c0_2], %0 {strides = array<i32>} : memref<1x2048xf32, #tpu.memory_space<vmem>>, vector<1x2048xf32>,
    return
  }
  func.func @transform_0(%arg0: i32) -> (i32, i32) {
    %c0_i32 = arith.constant 0 : i32
    %c0_i32_0 = arith.constant 0 : i32
    return %arg0, %c0_i32 : i32, i32
  }
  func.func @transform_1(%arg0: i32) -> (i32, i32) {
    %c0_i32 = arith.constant 0 : i32
    %c0_i32_0 = arith.constant 0 : i32
    return %arg0, %c0_i32 : i32, i32
  }
}

</mosaic_0001>

<bundles_post_ra>
// kernel: tpu_custom_call.1
= control target key start
LH: loop header
LB: loop body
LE: loop exit
PB: predicated region body
PF: predicated region fallthrough
CT: control target
= control target key end

     0   :  { %6 = vsyncpa [#allocation3], 0  ;;  %s126_s0 = inlined_call_operand.hbm [shape: f32[1,2048], index: 0, kind: input, shape index: {}]   ;;  %s127_s1 = inlined_call_operand.hbm [shape: f32[1,2048], index: 1, kind: output, shape index: {}]  }
   0x1   :  { %7 = vsyncpa [#allocation4], 0  ;;  %s90_s6 = smov [#allocation2]   ;;  %s42_s10 = scalar_lea.hbm %s126_s0, 256 }
   0x2   :  { %s14_s7 = sshll.u32 %s90_s6, 4  ;;  %p43_p0 = scmp.ne.s32.totalorder %s126_s0, %s42_s10  ;;  %s15_s7 = int_to_ptr.vmem [resolvable:$true] %s14_s7 }
   0x3   :  { %p46_p1 = scmp.lt.u32.totalorder %s42_s10, %s126_s0 }
   0x5   :  { %p48_p2 = pnand %p46_p1, %p43_p0 }
   0x7   :  { %51 = shalt.err (!%p48_p2)
}
   0x8   :  { %s52_s15 = scalar_lea.vmem %s15_s7, 256  ;;  %p57_p4 = scmp.lt.s32.totalorder %s15_s7, %s15_s7 }
   0x9   :  { %p53_p3 = scmp.ne.s32.totalorder %s15_s7, %s52_s15  ;;  %p58_p5 = scmp.lt.s32.totalorder %s52_s15, %s52_s15 }
   0xb   :  { %p59_p6 = por %p58_p5, %p57_p4 }
   0xd   :  { %p60_p7 = pnand %p59_p6, %p53_p3 }
   0xf   :  { %63 = shalt.err (!%p60_p7)
}
  0x10   :  { %17 = dma.hbm_to_vmem [thread:$0]  %s126_s0, 256, %s15_s7, [#allocation3]  }
  0x11   :  { %86 = dma.done.wait [#allocation3], 256  }
  0x12   :  { %87 = vsyncadd [#allocation3], 4294967040  ;;  %s91_s18 = smov [#allocation5]   ;;  %v21_v0 = vld [vmem:[#allocation2] sm:$0xff]  ;;  %v22_v1 = vld [vmem:[#allocation2 + $0x8] sm:$0xff] }
  0x13   :  { %s31_s19 = sshll.u32 %s91_s18, 4  ;;  %23 = vst [vmem:[#allocation5] sm:$0xff] %v21_v0  ;;  %24 = vst [vmem:[#allocation5 + $0x8] sm:$0xff] %v22_v1  ;;  %s32_s19 = int_to_ptr.vmem [resolvable:$true] %s31_s19 }
  0x14   :  { %s64_s20 = scalar_lea.vmem %s32_s19, 256  ;;  %p69_p9 = scmp.lt.s32.totalorder %s32_s19, %s32_s19 }
  0x15   :  { %p65_p8 = scmp.ne.s32.totalorder %s32_s19, %s64_s20  ;;  %p70_p10 = scmp.lt.s32.totalorder %s64_s20, %s64_s20 }
  0x17   :  { %p71_p11 = por %p70_p10, %p69_p9 }
  0x19   :  { %p72_p12 = pnand %p71_p11, %p65_p8 }
  0x1b   :  { %75 = shalt.err (!%p72_p12)
}
  0x1c   :  { %s76_s0 = scalar_lea.hbm %s127_s1, 256 }
  0x1d   :  { %p77_p13 = scmp.ne.s32.totalorder %s127_s1, %s76_s0  ;;  %p80_p0 = scmp.lt.u32.totalorder %s76_s0, %s127_s1 }
  0x1f   :  { %p82_p1 = pnand %p80_p0, %p77_p13 }
  0x21   :  { %85 = shalt.err (!%p82_p1)
}
  0x22   :  { %34 = dma.vmem_to_hbm [thread:$0]  %s32_s19, 256, %s127_s1, [#allocation4]  }
  0x23   :  { %88 = dma.done.wait [#allocation4], 256  }
  0x24   :  { %89 = vsyncadd [#allocation4], 4294967040 }
  0x25   :  { %38 = vsyncpa [#allocation3], 1 }
  0x26   :  { %39 = vsyncpa [#allocation4], 1 }

</bundles_post_ra>
